<compile_context>
chip_gen: v7x
topology: tpu7x:2x2x1
jax: 0.10.0
libtpu: 0.0.40
codegen_flags: <defaults>
</compile_context>

<pallas_src>
import jax
import jax.numpy as jnp
from jax.experimental import pallas as pl
from jax.experimental.pallas import tpu as pltpu


def _location_kernel(x_ref, w_ref, o_ref):
    # x_ref: (tile_n, 2K)  im2col'ed input rows (batch*time on sublanes)
    # w_ref: (2K, A)       fused conv (x) dense weights (same block every step)
    # o_ref: (tile_n, A)   output rows, already in PyTorch (b, t) row order
    o_ref[...] = jnp.dot(x_ref[...], w_ref[...],
                         preferred_element_type=jnp.float32)


def location_layer(attention_weights_cat, w_conv, w_dense):
    """
    attention_weights_cat: (B, 2, T)  float32  (PyTorch NCW convention)
    w_conv:  (F, 2, K)  Conv1d weight  (out_ch, in_ch, kernel)
    w_dense: (A, F)     Linear weight  (out_dim, in_dim)
    returns: (B, T, A)
    """
    B, C, T = attention_weights_cat.shape
    F_, Cw, K = w_conv.shape
    A = w_dense.shape[0]
    assert C == 2 and Cw == 2
    # With pad=(K-1)//2 the output length only equals T for odd K (the PyTorch
    # module implicitly assumes this too); even K would silently misalign.
    assert K % 2 == 1, "LocationLayer kernel requires an odd attention_kernel_size"
    pad = (K - 1) // 2

    x = attention_weights_cat.astype(jnp.float32)
    x_pad = jnp.pad(x, ((0, 0), (0, 0), (pad, pad)))             # (B, 2, T+K-1)

    # im2col with rows ordered (b, t) so the kernel output is already in the
    # PyTorch layout:  x_col[b*T + t, c*K + k] = x_pad[b, c, t + k]
    shifts = jnp.stack([x_pad[:, :, k:k + T] for k in range(K)], axis=-1)  # (B,2,T,K)
    x_col = shifts.transpose(0, 2, 1, 3).reshape(B * T, 2 * K)             # (B*T, 2K)

    # Fold conv weights into the dense projection (weight-only, done once):
    #   W_fused[c*K + k, a] = sum_f w_dense[a, f] * w_conv[f, c, k]
    w_fused = jnp.einsum(
        "af,fck->cka",
        w_dense.astype(jnp.float32), w_conv.astype(jnp.float32),
        precision=jax.lax.Precision.HIGHEST).reshape(2 * K, A)

    N = B * T
    M = 2 * K

    # Single block for small/medium problems (per-grid-step overhead would
    # dominate the tiny compute).  For large B*T, tile the row axis: each step
    # moves ~MB-scale blocks (DMA/compute overlap) and the axis is 'parallel'
    # so megacore chips can split the tiles.  Partial final blocks are fine:
    # rows are independent and out-of-range rows are masked on writeback.
    if N <= 4096:
        tile_n, grid_n = N, 1
    else:
        tile_n = 4096                      # multiple of 8 (sublane constraint)
        grid_n = pl.cdiv(N, tile_n)

    out_flat = pl.pallas_call(
        _location_kernel,
        out_shape=jax.ShapeDtypeStruct((N, A), jnp.float32),
        grid=(grid_n,),
        in_specs=[
            pl.BlockSpec((tile_n, M), lambda i: (i, 0)),   # im2col'ed input rows
            pl.BlockSpec((M, A), lambda i: (0, 0)),        # fused weights (resident)
        ],
        out_specs=pl.BlockSpec((tile_n, A), lambda i: (i, 0)),
        compiler_params=pltpu.CompilerParams(
            dimension_semantics=("parallel",)),
    )(x_col, w_fused)

    # Rows are already (b, t)-major -> contiguous, zero-cost reshape.
    return out_flat.reshape(B, T, A)


def _xavier_uniform(key, shape, fan_in, fan_out, gain):
    bound = gain * jnp.sqrt(6.0 / (fan_in + fan_out))
    return jax.random.uniform(key, shape, jnp.float32, -bound, bound)


def _reference(attention_weights_cat, w_conv, w_dense):
    # Pure-JAX reference of the PyTorch forward for verification.
    K = w_conv.shape[2]
    pad = (K - 1) // 2
    conv = jax.lax.conv_general_dilated(
        attention_weights_cat, w_conv,
        window_strides=(1,), padding=[(pad, pad)],
        dimension_numbers=("NCH", "OIH", "NCH"),
        precision=jax.lax.Precision.HIGHEST)
    conv_t = jnp.transpose(conv, (0, 2, 1))                   # (B, T, F)
    return jnp.einsum("btf,af->bta", conv_t, w_dense,
                      precision=jax.lax.Precision.HIGHEST)    # (B, T, A)


if __name__ == "__main__":
    # Small shapes: B=2, T=16 (encoder length), 2 attention channels,
    # n_filters=8, kernel_size=5, attention_dim=32.
    B, T = 2, 16
    n_filters, kernel_size, attention_dim = 8, 5, 32

    key = jax.random.PRNGKey(0)
    k_x, k_wc, k_wd = jax.random.split(key, 3)

    attention_weights_cat = jax.random.normal(k_x, (B, 2, T), jnp.float32)

    # Deterministic xavier_uniform init (gain: linear=1.0 for conv,
    # tanh=5/3 for the dense layer), matching the module's __init__ shapes.
    w_conv = _xavier_uniform(
        k_wc, (n_filters, 2, kernel_size),
        fan_in=2 * kernel_size, fan_out=n_filters * kernel_size, gain=1.0)
    w_dense = _xavier_uniform(
        k_wd, (attention_dim, n_filters),
        fan_in=n_filters, fan_out=attention_dim, gain=5.0 / 3.0)

    out = location_layer(attention_weights_cat, w_conv, w_dense)
    out = jax.block_until_ready(out)

    ref = _reference(attention_weights_cat, w_conv, w_dense)
    assert out.shape == (B, T, attention_dim)
    assert jnp.allclose(out, ref, atol=1e-4, rtol=1e-4)

    print("KERNEL_OK")
</pallas_src>

<mosaic_0001>
module attributes {stable_mosaic.version = 11 : i64} {
  func.func @_location_kernel(%arg0: i32, %arg1: memref<32x10xf32, #tpu.memory_space<vmem>>, %arg2: memref<10x32xf32, #tpu.memory_space<vmem>>, %arg3: memref<32x32xf32, #tpu.memory_space<vmem>>) attributes {dimension_semantics = [#tpu.dimension_semantics<parallel>], iteration_bounds = array<i64: 1>, scalar_prefetch = 0 : i64, scratch_operands = 0 : i64, tpu.core_type = #tpu.core_type<tc>, window_params = [{transform_indices = @transform_0, window_bounds = array<i64: 32, 10>}, {pipeline_mode = #tpu.pipeline_mode<synchronous>, transform_indices = @transform_1, window_bounds = array<i64: 10, 32>}, {transform_indices = @transform_2, window_bounds = array<i64: 32, 32>}]} {
    %c0 = arith.constant 0 : index
    %c0_0 = arith.constant 0 : index
    %0 = vector.load %arg1[%c0, %c0_0] : memref<32x10xf32, #tpu.memory_space<vmem>>, vector<32x10xf32>
    %c0_1 = arith.constant 0 : index
    %c0_2 = arith.constant 0 : index
    %1 = vector.load %arg2[%c0_1, %c0_2] : memref<10x32xf32, #tpu.memory_space<vmem>>, vector<10x32xf32>
    %cst = arith.constant dense<0.000000e+00> : vector<32x32xf32>
    %2 = tpu.matmul %0, %1, %cst {dimension_numbers = #tpu.dot_dimension_numbers<[1], [0], [0], [1], [0, 0, 1, 1], [], []>} : vector<32x10xf32>, vector<10x32xf32>, vector<32x32xf32> -> vector<32x32xf32>
    %c0_3 = arith.constant 0 : index
    %c0_4 = arith.constant 0 : index
    %3 = vector.load %arg3[%c0_3, %c0_4] : memref<32x32xf32, #tpu.memory_space<vmem>>, vector<32x32xf32>
    tpu.vector_store %arg3[%c0_3, %c0_4], %2 {strides = array<i32>} : memref<32x32xf32, #tpu.memory_space<vmem>>, vector<32x32xf32>,
    return
  }
  func.func @transform_0(%arg0: i32) -> (i32, i32) {
    %c0_i32 = arith.constant 0 : i32
    %c0_i32_0 = arith.constant 0 : i32
    return %arg0, %c0_i32 : i32, i32
  }
  func.func @transform_1(%arg0: i32) -> (i32, i32) {
    %c0_i32 = arith.constant 0 : i32
    %c0_i32_0 = arith.constant 0 : i32
    %c0_i32_1 = arith.constant 0 : i32
    return %c0_i32, %c0_i32_0 : i32, i32
  }
  func.func @transform_2(%arg0: i32) -> (i32, i32) {
    %c0_i32 = arith.constant 0 : i32
    %c0_i32_0 = arith.constant 0 : i32
    return %arg0, %c0_i32 : i32, i32
  }
}

</mosaic_0001>

<bundles_post_ra>
// kernel: tpu_custom_call.1
= control target key start
LH: loop header
LB: loop body
LE: loop exit
PB: predicated region body
PF: predicated region fallthrough
CT: control target
= control target key end

     0   :  { %vm31_vm0 = vcmask 1041408   ;;  %vm198_vm1 = vmmov 1   ;;  %vm18_vm3 = vcmask 80896   ;;  %s247_s0 = inlined_call_operand.vmem [shape: f32[32,10], index: 0, kind: input, shape index: {}]   ;;  %s248_s1 = inlined_call_operand.vmem [shape: f32[10,32], index: 1, kind: input, shape index: {}]   ;;  %s249_s2 = inlined_call_operand.hbm [shape: f32[32,32], index: 2, kind: output, shape index: {}]  }
   0x1   :  { %v16_v0 = vld [vmem:[%s248_s1] sm:$0xff]  ;;  %v17_v1 = vld [vmem:[%s248_s1 + $0x8] sm:$0x3]  ;;  %vm163_vm2 = vmpackc.low %vm31_vm0, %vm198_vm1 }
   0x2   :  { %v12_v2 = vld [vmem:[%s247_s0] sm:$0xff]  ;;  %v162_v3 = vpack.c.bf16 %v17_v1, %v16_v0  ;;  %v14_v4 = vld [vmem:[%s247_s0 + $0x10] sm:$0xff] }
   0x3   :  { %156 = vmatprep.mubr.msk.f32.mxu0 %vm18_vm3, %v12_v2  ;;  %159 = vmatprep.mubr.msk.f32.mxu1 %vm18_vm3, %v14_v4 }
   0x4   :  { %7 = vsyncpa [#allocation3], 0  ;;  %164 = vmatprep.subr.msk.bf16.mxu0 %vm163_vm2, %v162_v3  ;;  %168 = vmatprep.subr.msk.bf16.mxu1 %vm163_vm2, %v162_v3  ;;  %v13_v5 = vld [vmem:[%s247_s0 + $0x8] sm:$0xff]  ;;  %v15_v6 = vld [vmem:[%s247_s0 + $0x18] sm:$0xff]  ;;  %s199_s20 = smov [#allocation2]   ;;  %vm120_vm4 = vcmask 261120  }
   0x5   :  { %167 = vmatpush3.bf16.msk.msra.mxu0 %vm163_vm2, %v162_v3  ;;  %169 = vmatpush3.bf16.msk.msra.mxu1 %vm163_vm2, %v162_v3  ;;  %s130_s21 = sshll.u32 %s199_s20, 4  ;;  %s131_s21 = int_to_ptr.vmem [resolvable:$true] %s130_s21 }
   0x6   :  { %s174_s22 = scalar_lea.vmem %s131_s21, 512  ;;  %p179_p1 = scmp.lt.s32.totalorder %s131_s21, %s131_s21 }
   0x7   :  { %p175_p0 = scmp.ne.s32.totalorder %s131_s21, %s174_s22  ;;  %p180_p2 = scmp.lt.s32.totalorder %s174_s22, %s174_s22 }
   0x8   :  { %157 = vmatmul.mubr.msk.f32.vlgmr.msra.gmra.mrb[0].mxu0 %vm18_vm3, %v13_v5  ;;  %160 = vmatmul.mubr.msk.f32.vlgmr.msra.gmra.mrb[0].mxu1 %vm18_vm3, %v15_v6 }
   0x9   :  { %p181_p3 = por %p180_p2, %p179_p1 }
   0xb   :  { %p182_p4 = pnand %p181_p3, %p175_p0 }
  0xdb   :  { %v158_v7 = vpop.f32.mrb[0].mxu0  ;;  %v161_v8 = vpop.f32.mrb[0].mxu1 }
  0xdc   :  { %122 = vst.msk [vmem:[#allocation2 + $0x8] sm:$0xff] %vm120_vm4, %v158_v7  ;;  %124 = vst.msk [vmem:[#allocation2 + $0x18] sm:$0xff] %vm120_vm4, %v161_v8  ;;  %v101_v9 = vpop.f32.mrb[1].mxu0  ;;  %v111_v10 = vpop.f32.mrb[1].mxu1 }
  0xdd   :  { %121 = vst.msk [vmem:[#allocation2] sm:$0xff] %vm120_vm4, %v101_v9  ;;  %123 = vst.msk [vmem:[#allocation2 + $0x10] sm:$0xff] %vm120_vm4, %v111_v10 }
  0xde   :  { %185 = shalt.err (!%p182_p4)
}
  0xdf   :  { %s186_s24 = scalar_lea.hbm %s249_s2, 512 }
  0xe0   :  { %p187_p5 = scmp.ne.s32.totalorder %s249_s2, %s186_s24  ;;  %p190_p6 = scmp.lt.u32.totalorder %s186_s24, %s249_s2 }
  0xe2   :  { %p192_p7 = pnand %p190_p6, %p187_p5 }
  0xe4   :  { %195 = shalt.err (!%p192_p7)
}
  0xe5   :  { %s200_s29 = smov 128   ;;  %s201_s30 = smov 8  }
  0xe6   :  { %136 = dma.vmem_to_hbm [thread:$0]  %s131_s21, 512, %s249_s2, [#allocation3], %s200_s29, %s200_s29, %s201_s30  }
  0xe7   :  { %196 = dma.done.wait [#allocation3], 512  }
  0xe8   :  { %197 = vsyncadd [#allocation3], 4294966784 }
  0xe9   :  { %140 = vsyncpa [#allocation3], 1 }

</bundles_post_ra>
